<compile_context>
chip_gen: v7x
topology: tpu7x:2x2x1
jax: 0.10.0
libtpu: 0.0.40
codegen_flags: <defaults>
</compile_context>

<pallas_src>
import functools

import jax
import jax.numpy as jnp
from jax.experimental import pallas as pl
from jax.experimental.pallas import tpu as pltpu

COLUMN_COUNT = 7
ROW_COUNT = 6
IN_DIM = COLUMN_COUNT * ROW_COUNT   # 42
HIDDEN_DIM = 100                    # module default hidden_dim=100

_LANE = 128
_SUBLANE = 16                       # bf16 sublane packing; also fine for f32
_MAX_TILE = 16384                   # keeps VMEM well under v7x/v5e budgets


def _cdiv(a, b):
    return -(-a // b)


def _round_up(n, m):
    return _cdiv(n, m) * m


# ----------------------------------------------------------------------------
# Kernel
# ----------------------------------------------------------------------------
def heuristic_nn_kernel(x_ref, w1_ref, b1_ref, w2_ref, b2_ref, o_ref, *, rem):
    # x_ref: (bt, D) compute dtype    w1_ref: (D, Hp) compute dtype
    # b1_ref: (1, Hp) f32             w2_ref: (1, Hp) compute dtype
    # b2_ref: (1, 1) f32 in SMEM      o_ref: (1, 1, bt) f32
    x = x_ref[...]                                               # (bt, D)

    if rem:  # static: only emitted when B % bt != 0 (ragged last tile)
        # Zero the out-of-bounds rows of the partial last block so the padded
        # output rows are deterministic (they are sliced off in the wrapper).
        row = jax.lax.broadcasted_iota(jnp.int32, (x.shape[0], 1), 0)
        is_last = pl.program_id(0) == pl.num_programs(0) - 1
        x = jnp.where(jnp.logical_and(is_last, row >= rem), jnp.zeros_like(x), x)

    # First projection on the MXU, f32 accumulation; bias + ReLU on the VPU.
    h = jnp.dot(x, w1_ref[...], preferred_element_type=jnp.float32)  # (bt, Hp)
    h = jnp.maximum(h + b1_ref[...], 0.0)                            # ReLU, f32

    # Lane-dense second projection: (1, Hp) contracted against (bt, Hp) on the
    # last dims (q @ k^T style) -> (1, bt) row, so the output store is dense
    # along lanes instead of a lane-1 masked store.
    w2 = w2_ref[...]                                                 # (1, Hp)
    y = jax.lax.dot_general(
        w2, h.astype(w2.dtype),
        dimension_numbers=(((1,), (1,)), ((), ())),
        preferred_element_type=jnp.float32)                          # (1, bt)

    o_ref[0] = jnp.tanh(y + b2_ref[0, 0])                            # Tanh + bias


# ----------------------------------------------------------------------------
# Tiling policy
# ----------------------------------------------------------------------------
def _choose_batch_tile(B, batch_tile):
    """Pick (bt, n_tiles) with bt a multiple of 16, capped, v7x-friendly."""
    req = max(_SUBLANE, min(int(batch_tile), _MAX_TILE))
    n = _cdiv(B, req)
    # v7x has 2 TensorCores; the "parallel" grid axis shards steps across them.
    # Force an even tile count >= 2 once the batch is big enough to split.
    if B >= 2048:
        n = max(n, 2)
        n += n % 2
    bt = _round_up(_cdiv(B, n), _SUBLANE)
    n = _cdiv(B, bt)
    return bt, n


# ----------------------------------------------------------------------------
# Wrapper
# ----------------------------------------------------------------------------
def heuristic_nn(x, w1_t, b1, w2_t, b2, *, batch_tile=8192,
                 compute_dtype=jnp.bfloat16):
    """x: (B, D); w1_t: (D, H); b1: (1, H) or (H,); w2_t: (H, 1); b2: scalar-ish.

    Returns (B, 1) float32, matching tanh(relu(x@W1^T+b1)@W2^T+b2).
    compute_dtype=jnp.bfloat16 (default) feeds the MXU bf16 with f32
    accumulation; use jnp.float32 for strict f32-matmul numerics.
    Intended to be called under jax.jit (static batch_tile / compute_dtype).
    """
    x = jnp.asarray(x)
    B, D = x.shape
    H = w1_t.shape[1]
    cdt = jnp.dtype(compute_dtype)

    # --- zero-pad hidden dim to exactly one 128-lane tile (numerically exact) ---
    Hp = _round_up(H, _LANE)
    x_c = x.astype(cdt)                     # bf16 halves HBM bytes on the x stream
    w1_p = jnp.asarray(w1_t).astype(cdt)
    b1_p = jnp.asarray(b1, jnp.float32).reshape(1, H)
    w2_p = jnp.asarray(w2_t).astype(cdt)
    if Hp != H:
        w1_p = jnp.pad(w1_p, ((0, 0), (0, Hp - H)))
        b1_p = jnp.pad(b1_p, ((0, 0), (0, Hp - H)))
        w2_p = jnp.pad(w2_p, ((0, Hp - H), (0, 0)))
    w2_row = w2_p.reshape(1, Hp)            # (1, Hp) row for the q@k^T form
    b2_s = jnp.asarray(b2, jnp.float32).reshape(1, 1)

    # --- batch tiling: no jnp.pad of x; ragged tail handled by a partial block ---
    bt, n_tiles = _choose_batch_tile(B, batch_tile)
    rem = int(B % bt)                       # 0 -> no in-kernel masking emitted

    # --- VMEM budget: x lane-pads 42->128 and is double-buffered; h is f32 ---
    est = (2 * bt * _LANE * cdt.itemsize        # x tile, 2 pipeline buffers
           + bt * Hp * 4                        # h intermediate (f32)
           + 2 * bt * 4                         # (1,1,bt) f32 output, 2 buffers
           + (D * Hp + 2 * Hp) * cdt.itemsize   # resident weights
           + Hp * 4)                            # b1 (f32)
    vmem_limit = int(min(48 << 20, max(32 << 20, 2 * est)))  # < v7x 64 MiB physical

    kernel = functools.partial(heuristic_nn_kernel, rem=rem)

    out = pl.pallas_call(
        kernel,
        out_shape=jax.ShapeDtypeStruct((n_tiles, 1, bt), jnp.float32),
        grid_spec=pltpu.PrefetchScalarGridSpec(
            num_scalar_prefetch=0,
            grid=(n_tiles,),
            in_specs=[
                pl.BlockSpec((bt, D), lambda i: (i, 0)),     # x: streamed batch tile
                pl.BlockSpec((D, Hp), lambda i: (0, 0)),     # W1^T: resident
                pl.BlockSpec((1, Hp), lambda i: (0, 0)),     # b1 (f32)
                pl.BlockSpec((1, Hp), lambda i: (0, 0)),     # w2 row
                pl.BlockSpec(memory_space=pltpu.MemorySpace.SMEM),  # b2 scalar
            ],
            out_specs=pl.BlockSpec((1, 1, bt), lambda i: (i, 0, 0)),  # lane-dense row
        ),
        compiler_params=pltpu.CompilerParams(
            dimension_semantics=("parallel",),
            vmem_limit_bytes=vmem_limit),
    )(x_c, w1_p, b1_p, w2_row, b2_s)

    # Padded rows (if any) hold tanh(b2) from the zero-masked tail; slice them off.
    return out.reshape(n_tiles * bt, 1)[:B]


# ----------------------------------------------------------------------------
# Params / references
# ----------------------------------------------------------------------------
def init_params(key, in_dim=IN_DIM, hidden_dim=HIDDEN_DIM):
    """Deterministic init mimicking torch.nn.Linear default U(-1/sqrt(fan_in), +)."""
    k1, k2, k3, k4 = jax.random.split(key, 4)
    bound1 = 1.0 / jnp.sqrt(in_dim)
    bound2 = 1.0 / jnp.sqrt(hidden_dim)
    # Stored already transposed to (in, out) for the kernel.
    w1_t = jax.random.uniform(k1, (in_dim, hidden_dim), jnp.float32, -bound1, bound1)
    b1 = jax.random.uniform(k2, (1, hidden_dim), jnp.float32, -bound1, bound1)
    w2_t = jax.random.uniform(k3, (hidden_dim, 1), jnp.float32, -bound2, bound2)
    b2 = jax.random.uniform(k4, (1, 1), jnp.float32, -bound2, bound2)
    return w1_t, b1, w2_t, b2


def _reference_f32(x, w1_t, b1, w2_t, b2):
    return jnp.tanh(jnp.maximum(x @ w1_t + b1, 0.0) @ w2_t + b2)


def _reference_bf16(x, w1_t, b1, w2_t, b2):
    """Same bf16-input / f32-accumulate recipe as the kernel's default path."""
    h = jnp.dot(x.astype(jnp.bfloat16), w1_t.astype(jnp.bfloat16),
                preferred_element_type=jnp.float32) + b1
    h = jnp.maximum(h, 0.0).astype(jnp.bfloat16)
    y = jnp.dot(h, w2_t.astype(jnp.bfloat16),
                preferred_element_type=jnp.float32) + b2
    return jnp.tanh(y)


# ----------------------------------------------------------------------------
# Demo / self-test
# ----------------------------------------------------------------------------
if __name__ == "__main__":
    key = jax.random.PRNGKey(0)
    k_x, k_p = jax.random.split(key)
    w1_t, b1, w2_t, b2 = init_params(k_p)

    fwd = jax.jit(heuristic_nn, static_argnames=("batch_tile", "compute_dtype"))

    # 1) Tiny batch (B=2, like a couple of Connect-4 boards), default bf16 path.
    #    Exercises the partial single-tile (B < sublane tile) + row-mask path.
    B1 = 2
    x1 = jax.random.normal(k_x, (B1, IN_DIM), jnp.float32)
    out1 = jax.block_until_ready(fwd(x1, w1_t, b1, w2_t, b2))
    assert out1.shape == (B1, 1)
    assert jnp.allclose(out1, _reference_bf16(x1, w1_t, b1, w2_t, b2), atol=1e-4)
    assert jnp.allclose(out1, _reference_f32(x1, w1_t, b1, w2_t, b2), atol=5e-2)

    # 2) Non-divisible batch with a multi-step "parallel" grid (B=200, bt=64):
    #    exercises the no-pad ragged-tail handling.
    B2 = 200
    x2 = jax.random.normal(jax.random.PRNGKey(1), (B2, IN_DIM), jnp.float32)
    out2 = jax.block_until_ready(fwd(x2, w1_t, b1, w2_t, b2, batch_tile=64))
    assert out2.shape == (B2, 1)
    assert jnp.allclose(out2, _reference_bf16(x2, w1_t, b1, w2_t, b2), atol=1e-4)
    assert jnp.allclose(out2, _reference_f32(x2, w1_t, b1, w2_t, b2), atol=5e-2)

    # 3) f32 compute path: tight parity with the f32 reference.
    B3 = 256
    x3 = jax.random.normal(jax.random.PRNGKey(2), (B3, IN_DIM), jnp.float32)
    out3 = jax.block_until_ready(
        fwd(x3, w1_t, b1, w2_t, b2, compute_dtype=jnp.float32))
    assert out3.shape == (B3, 1)
    assert jnp.allclose(out3, _reference_f32(x3, w1_t, b1, w2_t, b2),
                        atol=1e-5, rtol=1e-5)

    print("KERNEL_OK")
</pallas_src>

<mosaic_0001>
module attributes {stable_mosaic.version = 11 : i64} {
  func.func @heuristic_nn_kernel(%arg0: i32, %arg1: memref<16x42xbf16, #tpu.memory_space<vmem>>, %arg2: memref<42x128xbf16, #tpu.memory_space<vmem>>, %arg3: memref<1x128xf32, #tpu.memory_space<vmem>>, %arg4: memref<1x128xbf16, #tpu.memory_space<vmem>>, %arg5: memref<1x1xf32, #tpu.memory_space<smem>>, %arg6: memref<1x1x16xf32, #tpu.memory_space<vmem>>) attributes {dimension_semantics = [#tpu.dimension_semantics<parallel>], iteration_bounds = array<i64: 1>, scalar_prefetch = 0 : i64, scratch_operands = 0 : i64, tpu.core_type = #tpu.core_type<tc>, window_params = [{transform_indices = @transform_0, window_bounds = array<i64: 16, 42>}, {pipeline_mode = #tpu.pipeline_mode<synchronous>, transform_indices = @transform_1, window_bounds = array<i64: 42, 128>}, {pipeline_mode = #tpu.pipeline_mode<synchronous>, transform_indices = @transform_2, window_bounds = array<i64: 1, 128>}, {pipeline_mode = #tpu.pipeline_mode<synchronous>, transform_indices = @transform_3, window_bounds = array<i64: 1, 128>}, {transform_indices = @transform_4, window_bounds = array<i64: 1, 1>}, {transform_indices = @transform_5, window_bounds = array<i64: 1, 1, 16>}]} {
    %c0 = arith.constant 0 : index
    %c0_0 = arith.constant 0 : index
    %0 = vector.load %arg1[%c0, %c0_0] : memref<16x42xbf16, #tpu.memory_space<vmem>>, vector<16x42xbf16>
    %1 = tpu.iota {dimensions = array<i32: 0>} : vector<16x1xi32>
    %c0_i32 = arith.constant 0 : i32
    %2 = arith.cmpi eq, %arg0, %c0_i32 : i32
    %c2_i32 = arith.constant 2 : i32
    %3 = vector.broadcast %c2_i32 : i32 to vector<16x1xi32>
    %4 = arith.cmpi sge, %1, %3 : vector<16x1xi32>
    %5 = vector.broadcast %2 : i1 to vector<16x1xi1>
    %6 = arith.andi %5, %4 : vector<16x1xi1>
    %cst = arith.constant 0.000000e+00 : bf16
    %7 = vector.broadcast %cst : bf16 to vector<16x42xbf16>
    %8 = vector.shape_cast %6 : vector<16x1xi1> to vector<16x1xi1>
    %9 = vector.broadcast %8 : vector<16x1xi1> to vector<16x42xi1>
    %10 = arith.select %9, %7, %0 : vector<16x42xi1>, vector<16x42xbf16>
    %c0_1 = arith.constant 0 : index
    %c0_2 = arith.constant 0 : index
    %11 = vector.load %arg2[%c0_1, %c0_2] : memref<42x128xbf16, #tpu.memory_space<vmem>>, vector<42x128xbf16>
    %cst_3 = arith.constant dense<0.000000e+00> : vector<16x128xf32>
    %12 = tpu.matmul %10, %11, %cst_3 {dimension_numbers = #tpu.dot_dimension_numbers<[1], [0], [0], [1], [0, 0, 1, 1], [], []>} : vector<16x42xbf16>, vector<42x128xbf16>, vector<16x128xf32> -> vector<16x128xf32>
    %c0_4 = arith.constant 0 : index
    %c0_5 = arith.constant 0 : index
    %13 = vector.load %arg3[%c0_4, %c0_5] : memref<1x128xf32, #tpu.memory_space<vmem>>, vector<1x128xf32>
    %14 = vector.broadcast %13 : vector<1x128xf32> to vector<16x128xf32>
    %15 = arith.addf %12, %14 : vector<16x128xf32>
    %cst_6 = arith.constant 0.000000e+00 : f32
    %16 = vector.broadcast %cst_6 : f32 to vector<16x128xf32>
    %17 = arith.maximumf %15, %16 : vector<16x128xf32>
    %c0_7 = arith.constant 0 : index
    %c0_8 = arith.constant 0 : index
    %18 = vector.load %arg4[%c0_7, %c0_8] : memref<1x128xbf16, #tpu.memory_space<vmem>>, vector<1x128xbf16>
    %19 = arith.truncf %17 : vector<16x128xf32> to vector<16x128xbf16>
    %cst_9 = arith.constant dense<0.000000e+00> : vector<1x16xf32>
    %20 = tpu.matmul %18, %19, %cst_9 {dimension_numbers = #tpu.dot_dimension_numbers<[1], [1], [0], [0], [0, 0, 1, 0], [], []>} : vector<1x128xbf16>, vector<16x128xbf16>, vector<1x16xf32> -> vector<1x16xf32>
    %c0_10 = arith.constant 0 : index
    %c0_11 = arith.constant 0 : index
    %21 = memref.load %arg5[%c0_10, %c0_11] : memref<1x1xf32, #tpu.memory_space<smem>>
    %22 = vector.broadcast %21 : f32 to vector<1x16xf32>
    %23 = arith.addf %20, %22 : vector<1x16xf32>
    %24 = math.tanh %23 : vector<1x16xf32>
    %c0_12 = arith.constant 0 : index
    %c0_13 = arith.constant 0 : index
    %c0_14 = arith.constant 0 : index
    %25 = vector.load %arg6[%c0_12, %c0_13, %c0_14] : memref<1x1x16xf32, #tpu.memory_space<vmem>>, vector<1x1x16xf32>
    %26 = vector.shape_cast %25 : vector<1x1x16xf32> to vector<1x16xf32>
    %27 = vector.shape_cast %24 : vector<1x16xf32> to vector<1x1x16xf32>
    tpu.vector_store %arg6[%c0_12, %c0_13, %c0_14], %27 {strides = array<i32>} : memref<1x1x16xf32, #tpu.memory_space<vmem>>, vector<1x1x16xf32>,
    return
  }
  func.func @transform_0(%arg0: i32) -> (i32, i32) {
    %c0_i32 = arith.constant 0 : i32
    %c0_i32_0 = arith.constant 0 : i32
    return %arg0, %c0_i32 : i32, i32
  }
  func.func @transform_1(%arg0: i32) -> (i32, i32) {
    %c0_i32 = arith.constant 0 : i32
    %c0_i32_0 = arith.constant 0 : i32
    %c0_i32_1 = arith.constant 0 : i32
    return %c0_i32, %c0_i32_0 : i32, i32
  }
  func.func @transform_2(%arg0: i32) -> (i32, i32) {
    %c0_i32 = arith.constant 0 : i32
    %c0_i32_0 = arith.constant 0 : i32
    %c0_i32_1 = arith.constant 0 : i32
    return %c0_i32, %c0_i32_0 : i32, i32
  }
  func.func @transform_3(%arg0: i32) -> (i32, i32) {
    %c0_i32 = arith.constant 0 : i32
    %c0_i32_0 = arith.constant 0 : i32
    %c0_i32_1 = arith.constant 0 : i32
    return %c0_i32, %c0_i32_0 : i32, i32
  }
  func.func @transform_4(%arg0: i32) -> (i32, i32) {
    %c0_i32 = arith.constant 0 : i32
    %c0_i32_0 = arith.constant 0 : i32
    %c0_i32_1 = arith.constant 0 : i32
    return %c0_i32, %c0_i32_0 : i32, i32
  }
  func.func @transform_5(%arg0: i32) -> (i32, i32, i32) {
    %c0_i32 = arith.constant 0 : i32
    %c0_i32_0 = arith.constant 0 : i32
    %c0_i32_1 = arith.constant 0 : i32
    return %arg0, %c0_i32, %c0_i32_0 : i32, i32, i32
  }
}

</mosaic_0001>

<bundles_post_ra>
// kernel: heuristic_nn.1
= control target key start
LH: loop header
LB: loop body
LE: loop exit
PB: predicated region body
PF: predicated region fallthrough
CT: control target
= control target key end

     0   :  { %v31_v0 = vlaneseq  ;;  %v374_v1 = vmov 0.0   ;;  %vm375_vm0 = vmmov 0   ;;  %vm235_vm1 = vcmask 1044480   ;;  %s479_s1 = inlined_call_operand.vmem [shape: bf16[42,128], index: 1, kind: input, shape index: {}]   ;;  %s480_s0 = inlined_call_operand.vmem [shape: bf16[2,42], index: 0, kind: input, shape index: {}]   ;;  %s481_s2 = inlined_call_operand.vmem [shape: f32[1,128], index: 2, kind: input, shape index: {}]   ;;  %s482_s3 = inlined_call_operand.vmem [shape: bf16[1,128], index: 3, kind: input, shape index: {}]   ;;  %s483_s4 = inlined_call_operand.<no memory space> [shape: f32[1,1], index: 4, kind: input, shape index: {}]   ;;  %s484_s5 = inlined_call_operand.vmem [shape: f32[1,1,16], index: 5, kind: output, shape index: {}]  }
   0x1   :  { %344 = vmatprep.subr.bf16.mxu0 %v374_v1  ;;  %v369_v2 = vld [vmem:[%s479_s1] sm:$0xff]   ;;  %350 = vmatprep.mubr.msk.bf16.mxu0 %vm375_vm0, %v374_v1  ;;  %v370_v3 = vld [vmem:[%s479_s1 + $0x8] sm:$0xff]   ;;  %v371_v5 = vld [vmem:[%s479_s1 + $0x10] sm:$0x1f]   ;;  %v376_v7 = vmov 269488144  }
   0x2   :  { %v419_v4 = vshrl.u32 %v31_v0, 7  ;;  %354 = vmatprep.subr.bf16.mxu1 %v374_v1  ;;  %356 = vmatprep.mubr.msk.bf16.mxu1 %vm375_vm0, %v374_v1  ;;  %v237_v6 = vsel %vm235_vm1, %v371_v5, 0  ;;  %v49_v8 = vunpack.c.l.s4 %v376_v7  ;;  %v377_v9 = vmov 842150450   ;;  %v23_v41 = vld [vmem:[%s480_s0] sm:$0x1] }
   0x3   :  { %345 = vmatpush3.bf16.msra.mxu0 %v369_v2  ;;  %v56_v10 = vunpack.c.l.s4 %v377_v9  ;;  %v378_v11 = vmov 1414812756   ;;  %v379_v13 = vmov 1987475062   ;;  %v380_v17 = vmov 1966171168  }
   0x4   :  { %346 = vmatprep.subr.bf16.mxu0 %v374_v1  ;;  %vm35_vm2 = vcmp.ge.s32.totalorder %v419_v4, 2  ;;  %v63_v12 = vunpack.c.l.s4 %v378_v11  ;;  %v70_v14 = vunpack.c.l.s4 %v379_v13  ;;  %v50_v15 = vunpack.c.0.s8 %v49_v8  ;;  %v24_v46 = vld [vmem:[%s480_s0 + $0x1] sm:$0x1]  ;;  %v25_v47 = vld [vmem:[%s480_s0 + $0x2] sm:$0x1] }
   0x5   :  { %v57_v16 = vunpack.c.0.s8 %v56_v10  ;;  %v425_v18 = vunpack.c.l.s4 %v380_v17  ;;  %v381_v19 = vmov 0   ;;  %v382_v30 = vmov 1   ;;  %v26_v48 = vld [vmem:[%s480_s0 + $0x3] sm:$0x1]  ;;  %v27_v53 = vld [vmem:[%s480_s0 + $0x4] sm:$0x1] }
   0x6   :  { %v46_v20 = vsel %vm35_vm2, 1, %v381_v19  ;;  %v64_v21 = vunpack.c.0.s8 %v63_v12  ;;  %v71_v22 = vunpack.c.0.s8 %v70_v14  ;;  %v53_v23 = vsub.s32 %v50_v15, %v419_v4  ;;  %v28_v54 = vld [vmem:[%s480_s0 + $0x5] sm:$0x1]  ;;  %v29_v55 = vld [vmem:[%s480_s0 + $0x6] sm:$0x1] }
   0x7   :  { %347 = vmatpush3.bf16.msra.mxu0 %v370_v3  ;;  %v60_v24 = vsub.s32 %v57_v16, %v419_v4  ;;  %v171_v27 = vunpack.c.0.s8 %v425_v18  ;;  %v30_v60 = vld [vmem:[%s480_s0 + $0x7] sm:$0x1] }
   0x8   :  { %348 = vmatprep.subr.bf16.mxu0 %v374_v1  ;;  %v67_v25 = vsub.s32 %v64_v21, %v419_v4  ;;  %v74_v26 = vsub.s32 %v71_v22, %v419_v4  ;;  %v54_v28 = vrot.slane %v46_v20, %v53_v23  ;;  %v82_v31 = vrot.slane %v382_v30, %v53_v23  ;;  %v333_v22 = vld [vmem:[%s481_s2] ss:$0 sm:$0xff] }
   0x9   :  { %v61_v29 = vrot.slane %v46_v20, %v60_v24  ;;  %v89_v32 = vrot.slane %v382_v30, %v60_v24  ;;  %v174_v11 = vsub.s32 %v171_v27, %v419_v4 }
   0xa   :  { %v68_v33 = vrot.slane %v46_v20, %v67_v25  ;;  %v75_v34 = vrot.slane %v46_v20, %v74_v26  ;;  %v96_v35 = vrot.slane %v382_v30, %v67_v25  ;;  %v103_v36 = vrot.slane %v382_v30, %v74_v26  ;;  %v282_v30 = vld [vmem:[%s482_s3] sm:$0x1] }
   0xb   :  { %349 = vmatpush3.bf16.msra.mxu0 %v237_v6  ;;  %vm104_vm3 = vcmp.ne.s32.totalorder %v54_v28, 0  ;;  %vm105_vm4 = vcmp.ne.s32.totalorder %v61_v29, 0  ;;  %vm108_vm5 = vcmp.ne.s32.totalorder %v82_v31, 0  ;;  %vm109_vm6 = vcmp.ne.s32.totalorder %v89_v32, 0 }
   0xc   :  { %vm106_vm7 = vcmp.ne.s32.totalorder %v68_v33, 0  ;;  %vm107_vm8 = vcmp.ne.s32.totalorder %v75_v34, 0  ;;  %vm110_vm9 = vcmp.ne.s32.totalorder %v96_v35, 0  ;;  %vm111_vm10 = vcmp.ne.s32.totalorder %v103_v36, 0 }
   0xd   :  { %v112_v37 = vsel %vm104_vm3, 1, %v381_v19  ;;  %v113_v38 = vsel %vm105_vm4, 1, %v381_v19  ;;  %v114_v39 = vsel %vm106_vm7, 1, %v381_v19  ;;  %v115_v40 = vsel %vm107_vm8, 1, %v381_v19 }
   0xe   :  { %v116_v42 = vsel %vm108_vm5, 1, %v381_v19  ;;  %v117_v43 = vsel %vm109_vm6, 1, %v381_v19  ;;  %v118_v44 = vsel %vm110_vm9, 1, %v381_v19  ;;  %v119_v45 = vsel %vm111_vm10, 1, %v381_v19 }
   0xf   :  { %v120_v49 = vpack.c.b16 %v112_v37, %v112_v37  ;;  %v121_v50 = vpack.c.b16 %v113_v38, %v113_v38  ;;  %v122_v51 = vpack.c.b16 %v114_v39, %v114_v39  ;;  %v123_v52 = vpack.c.b16 %v115_v40, %v115_v40 }
  0x10   :  { %v124_v56 = vpack.c.b16 %v116_v42, %v116_v42  ;;  %v125_v57 = vpack.c.b16 %v117_v43, %v117_v43  ;;  %v126_v58 = vpack.c.b16 %v118_v44, %v118_v44  ;;  %v127_v59 = vpack.c.b16 %v119_v45, %v119_v45 }
  0x11   :  { %vm458_vm11 = vcmp.ne.s16.totalorder %v120_v49, 0  ;;  %vm129_vm12 = vcmp.ne.s16.totalorder %v121_v50, 0  ;;  %vm130_vm13 = vcmp.ne.s16.totalorder %v122_v51, 0  ;;  %vm131_vm14 = vcmp.ne.s16.totalorder %v123_v52, 0 }
  0x12   :  { %vm132_vm15 = vcmp.ne.s16.totalorder %v124_v56, 0  ;;  %vm133_vm0 = vcmp.ne.s16.totalorder %v125_v57, 0  ;;  %vm134_vm1 = vcmp.ne.s16.totalorder %v126_v58, 0  ;;  %vm135_vm2 = vcmp.ne.s16.totalorder %v127_v59, 0 }
  0x13   :  { %v136_v62 = vsel %vm458_vm11, 0, %v23_v41  ;;  %v137_v63 = vsel %vm129_vm12, 0, %v24_v46  ;;  %v138_v0 = vsel %vm130_vm13, 0, %v25_v47  ;;  %v139_v1 = vsel %vm131_vm14, 0, %v26_v48 }
  0x14   :  { %v140_v2 = vsel %vm132_vm15, 0, %v27_v53  ;;  %v141_v3 = vsel %vm133_vm0, 0, %v28_v54  ;;  %v142_v5 = vsel %vm134_vm1, 0, %v29_v55  ;;  %v143_v6 = vsel %vm135_vm2, 0, %v30_v60 }
  0x15   :  { %v165_v7 = vcombine.low %v136_v62, %v137_v63  ;;  %v166_v8 = vcombine.low %v138_v0, %v139_v1  ;;  %v167_v9 = vcombine.low %v140_v2, %v141_v3  ;;  %v168_v10 = vcombine.low %v142_v5, %v143_v6 }
  0x16   :  { %vm231_vm3 = vcmask 343040   ;;  %v285_v31 = vstv %s483_s4  ;;  %vm327_vm4 = vcmask 122880  }
  0x17   :  { %v175_v12 = vrot.slane %v165_v7, %v174_v11  ;;  %v182_v13 = vrot.slane %v166_v8, %v174_v11  ;;  %v189_v14 = vrot.slane %v167_v9, %v174_v11  ;;  %v196_v15 = vrot.slane %v168_v10, %v174_v11 }
  0x19   :  { %v197_v16 = vcombine.low %v175_v12, %v182_v13  ;;  %v198_v17 = vcombine.low %v189_v14, %v196_v15 }
  0x1b   :  { %v205_v19 = vrot.slane %v197_v16, %v174_v11  ;;  %v212_v20 = vrot.slane %v198_v17, %v174_v11 }
  0x1d   :  { %v213_v21 = vcombine.low %v205_v19, %v212_v20 }
  0x1f   :  { %351 = vmatmul.mubr.msk.bf16.vlgmr.msra.gmra.mrb[0].mxu0 %vm231_vm3, %v213_v21 }
  0xf2   :  { %v273_v23 = vpop.f32.mrb[0].mxu0 }
  0xf3   :  { %v274_v24 = vadd.f32 %v333_v22, %v273_v23  ;;  %v352_v25 = vpop.f32.mrb[1].mxu0 }
  0xf4   :  { %v276_v18 = vpop.f32.mrb[2].mxu0 }
  0xf5   :  { %v277_v4 = vadd.f32 %v333_v22, %v276_v18  ;;  %v353_v26 = vpop.f32.mrb[3].mxu0  ;;  %v280_v27 = vmax.f32 %v274_v24, 0.0 }
  0xf7   :  { %v281_v28 = vmax.f32 %v277_v4, 0.0 }
  0xf9   :  { %v283_v29 = vpack.c.bf16 %v281_v28, %v280_v27 }
  0xfb   :  { %355 = vmatpush3.bf16.xpose.msra.mxu1 %v283_v29 }
 0x102   :  { %357 = vmatmul.mubr.bf16.vlgmr.msra.gmra.mrb[0].mxu1 %v282_v30 }
 0x1d5   :  { %v320_v32 = vpop.f32.mrb[0].mxu1 }
 0x1d6   :  { %v321_v33 = vadd.f32 %v320_v32, %v285_v31  ;;  %v358_v34 = vpop.f32.mrb[1].mxu1 }
 0x1d7   :  { %v323_v35 = vpop.f32.mrb[2].mxu1 }
 0x1d8   :  { %372 = vtanh.f32 %v321_v33  ;;  %v359_v36 = vpop.f32.mrb[3].mxu1 }
 0x1e2   :  { %v373_v37 = vpop.eup %372 }
 0x1e3   :  { %328 = vst.msk [vmem:[%s484_s5] sm:$0x1] %vm327_vm4, %v373_v37 }

</bundles_post_ra>
